<compile_context>
chip_gen: v6e
topology: v6e:2x2x1
jax: 0.10.0
libtpu: 0.0.40
codegen_flags: <defaults>
</compile_context>

<pallas_src>
import jax
import jax.numpy as jnp
from jax.experimental import pallas as pl
from jax.experimental.pallas import tpu as pltpu

# ---- problem sizes (small, consistent with the module) ----
B = 2            # batch
T = 8            # sequence length
E = 32           # embedding_num
H = 32           # hidden_num (must equal E, as the PyTorch module implies)
C = 16           # class_num
CORPUS = 100     # corpus_len
CORPUS_PAD = 128 # vocab padded to a full lane width for the one-hot gather


def rnn_classifier_kernel(ids_ref, emb_ref, WwT_ref, bw_ref, WuT_ref, bu_ref,
                          WcT_ref, bc_ref,
                          pred_ref, o_ref, tlast_ref):
    """Embedding gather + recurrence + classifier + argmax, all in VMEM.

    ids_ref : (T*B, 1) i32 (timestep-major)   emb_ref : (CORPUS_PAD, E) f32
    WwT/WuT : (E/H, H) f32                    WcT     : (H, C) f32
    bw/bu   : (1, H) f32                      bc      : (1, C) f32
    pred_ref: (T*B, 1) i32 out (t-major)      o_ref   : (B, T*H) f32 out (lane-dense)
    tlast_ref: (B, H) f32 out
    """
    # ---- fused embedding gather as a one-hot MXU matmul ----
    ids = ids_ref[...]                                             # (T*B, 1) i32
    vocab_lane = jax.lax.broadcasted_iota(jnp.int32, (T * B, CORPUS_PAD), 1)
    onehot = (vocab_lane == ids).astype(jnp.float32)               # (T*B, 128)
    x_emb = jnp.dot(onehot, emb_ref[...],
                    preferred_element_type=jnp.float32)            # (T*B, E)

    # ---- hoisted loads / bias broadcasts (once, not per unrolled step) ----
    WwT = WwT_ref[...]
    WuT = WuT_ref[...]
    WcT = WcT_ref[...]
    bw_b = jnp.broadcast_to(bw_ref[...], (T * B, H))
    bu_b = jnp.broadcast_to(bu_ref[...], (B, H))
    bc_b = jnp.broadcast_to(bc_ref[...], (T * B, C))

    # ---- single hoisted W matmul for every timestep at once ----
    h_all = jnp.dot(x_emb, WwT, preferred_element_type=jnp.float32) + bw_b

    # ---- serial recurrence (only the truly dependent part stays in the loop) ----
    t = jnp.zeros((B, H), jnp.float32)
    outs = []
    for i in range(T):
        h = h_all[i * B:(i + 1) * B, :]                            # (B, H)
        h_ = h * 0.2 + t * 0.8
        t = jnp.dot(jnp.tanh(h_), WuT,
                    preferred_element_type=jnp.float32) + bu_b     # U(tanh(h_))
        outs.append(t)

    tlast_ref[...] = t

    # ---- lane-dense hidden-state output: one (B, T*H) = (2, 256) store ----
    o_ref[...] = jnp.concatenate(outs, axis=1)

    # ---- single hoisted classifier matmul; logits stay in vregs ----
    O_rows = jnp.concatenate(outs, axis=0)                         # (T*B, H), t-major
    pre = jnp.dot(O_rows, WcT, preferred_element_type=jnp.float32) + bc_b

    # argmax over classes (first max index, like torch.argmax)
    mx = jnp.max(pre, axis=-1, keepdims=True)
    cls_lane = jax.lax.broadcasted_iota(jnp.int32, pre.shape, 1)
    idx = jnp.min(jnp.where(pre == mx, cls_lane, jnp.full_like(cls_lane, C)),
                  axis=-1, keepdims=True)                          # (T*B, 1)
    pred_ref[...] = idx.astype(jnp.int32)


def model_forward(x_ids, params):
    """Full Model.forward(x, label=None) inference path: argmax predictions
    (plus the RNN outputs O and final t, mirroring RNN_Model's return)."""
    vmem = pl.BlockSpec(memory_space=pltpu.MemorySpace.VMEM)

    # timestep-major (row = i*B + b) token ids as a small VMEM column vector
    ids_tm = x_ids.astype(jnp.int32).T.reshape(T * B, 1)
    # pad vocab to a full 128-lane width so the one-hot gather matmul is aligned
    emb_pad = jnp.pad(params["emb"], ((0, CORPUS_PAD - CORPUS), (0, 0)))

    pred_flat, o_wide, t_last = pl.pallas_call(
        rnn_classifier_kernel,
        out_shape=(
            jax.ShapeDtypeStruct((T * B, 1), jnp.int32),    # argmax (t-major rows)
            jax.ShapeDtypeStruct((B, T * H), jnp.float32),  # O, lane-dense slab
            jax.ShapeDtypeStruct((B, H), jnp.float32),      # final t
        ),
        in_specs=[vmem] * 8,
        out_specs=(vmem, vmem, vmem),
    )(ids_tm, emb_pad,
      params["WwT"], params["bw"], params["WuT"], params["bu"],
      params["WcT"], params["bc"])

    pred = pred_flat.reshape(T, B).transpose(1, 0)   # -> (B, T)
    o_all = o_wide.reshape(B, T, H)
    return pred, o_all, t_last


def reference_forward(x_ids, params):
    """Pure-JAX reference mirroring the PyTorch code."""
    emb = params["emb"][x_ids]
    t = jnp.zeros((B, H), jnp.float32)
    outs = []
    for i in range(T):
        h = emb[:, i] @ params["WwT"] + params["bw"][0]
        h_ = h * 0.2 + t * 0.8
        t = jnp.tanh(h_) @ params["WuT"] + params["bu"][0]
        outs.append(t)
    O = jnp.stack(outs, axis=1)
    pre = O @ params["WcT"] + params["bc"][0]
    return jnp.argmax(pre, axis=-1), O, t


def init_params(key):
    ks = jax.random.split(key, 7)
    return {
        "emb": jax.random.normal(ks[0], (CORPUS, E), jnp.float32) * 0.5,
        "WwT": jax.random.normal(ks[1], (E, H), jnp.float32) * 0.2,   # W (transposed)
        "bw":  jax.random.normal(ks[2], (1, H), jnp.float32) * 0.1,
        "WuT": jax.random.normal(ks[3], (H, H), jnp.float32) * 0.2,   # U (transposed)
        "bu":  jax.random.normal(ks[4], (1, H), jnp.float32) * 0.1,
        "WcT": jax.random.normal(ks[5], (H, C), jnp.float32) * 0.2,   # classifier (T)
        "bc":  jax.random.normal(ks[6], (1, C), jnp.float32) * 0.1,
        # TODO(synk): nn.Linear `V` in RNN_Model (and `his`) is never used in
        # forward; the CrossEntropyLoss training branch (label != None) is omitted.
    }


if __name__ == "__main__":
    key = jax.random.PRNGKey(0)
    pkey, xkey = jax.random.split(key)
    params = init_params(pkey)
    x_ids = jax.random.randint(xkey, (B, T), 0, CORPUS, dtype=jnp.int32)

    pred, o_all, t_last = jax.block_until_ready(model_forward(x_ids, params))

    ref_pred, ref_o, ref_t = reference_forward(x_ids, params)
    assert pred.shape == (B, T) and pred.dtype == jnp.int32
    assert bool(jnp.all(pred == ref_pred))
    assert bool(jnp.allclose(o_all, ref_o, atol=1e-4, rtol=1e-4))
    assert bool(jnp.allclose(t_last, ref_t, atol=1e-4, rtol=1e-4))

    print("KERNEL_OK")
</pallas_src>

<mosaic_0001>
module attributes {stable_mosaic.version = 11 : i64} {
  func.func @rnn_classifier_kernel(%arg0: memref<16x1xi32, #tpu.memory_space<vmem>>, %arg1: memref<128x32xf32, #tpu.memory_space<vmem>>, %arg2: memref<32x32xf32, #tpu.memory_space<vmem>>, %arg3: memref<1x32xf32, #tpu.memory_space<vmem>>, %arg4: memref<32x32xf32, #tpu.memory_space<vmem>>, %arg5: memref<1x32xf32, #tpu.memory_space<vmem>>, %arg6: memref<32x16xf32, #tpu.memory_space<vmem>>, %arg7: memref<1x16xf32, #tpu.memory_space<vmem>>, %arg8: memref<16x1xi32, #tpu.memory_space<vmem>>, %arg9: memref<2x256xf32, #tpu.memory_space<vmem>>, %arg10: memref<2x32xf32, #tpu.memory_space<vmem>>) attributes {dimension_semantics = [], scalar_prefetch = 0 : i64, scratch_operands = 0 : i64, tpu.core_type = #tpu.core_type<tc>} {
    %c0 = arith.constant 0 : index
    %c0_0 = arith.constant 0 : index
    %0 = vector.load %arg0[%c0, %c0_0] : memref<16x1xi32, #tpu.memory_space<vmem>>, vector<16x1xi32>
    %1 = tpu.iota {dimensions = array<i32: 1>} : vector<16x128xi32>
    %2 = vector.broadcast %0 : vector<16x1xi32> to vector<16x128xi32>
    %3 = arith.cmpi eq, %1, %2 : vector<16x128xi32>
    %4 = arith.extui %3 : vector<16x128xi1> to vector<16x128xi32>
    %5 = arith.sitofp %4 : vector<16x128xi32> to vector<16x128xf32>
    %c0_1 = arith.constant 0 : index
    %c0_2 = arith.constant 0 : index
    %6 = vector.load %arg1[%c0_1, %c0_2] : memref<128x32xf32, #tpu.memory_space<vmem>>, vector<128x32xf32>
    %cst = arith.constant dense<0.000000e+00> : vector<16x32xf32>
    %7 = tpu.matmul %5, %6, %cst {dimension_numbers = #tpu.dot_dimension_numbers<[1], [0], [0], [1], [0, 0, 1, 1], [], []>} : vector<16x128xf32>, vector<128x32xf32>, vector<16x32xf32> -> vector<16x32xf32>
    %c0_3 = arith.constant 0 : index
    %c0_4 = arith.constant 0 : index
    %8 = vector.load %arg2[%c0_3, %c0_4] : memref<32x32xf32, #tpu.memory_space<vmem>>, vector<32x32xf32>
    %c0_5 = arith.constant 0 : index
    %c0_6 = arith.constant 0 : index
    %9 = vector.load %arg4[%c0_5, %c0_6] : memref<32x32xf32, #tpu.memory_space<vmem>>, vector<32x32xf32>
    %c0_7 = arith.constant 0 : index
    %c0_8 = arith.constant 0 : index
    %10 = vector.load %arg6[%c0_7, %c0_8] : memref<32x16xf32, #tpu.memory_space<vmem>>, vector<32x16xf32>
    %c0_9 = arith.constant 0 : index
    %c0_10 = arith.constant 0 : index
    %11 = vector.load %arg3[%c0_9, %c0_10] : memref<1x32xf32, #tpu.memory_space<vmem>>, vector<1x32xf32>
    %12 = vector.shape_cast %11 : vector<1x32xf32> to vector<1x32xf32>
    %13 = vector.broadcast %12 : vector<1x32xf32> to vector<16x32xf32>
    %c0_11 = arith.constant 0 : index
    %c0_12 = arith.constant 0 : index
    %14 = vector.load %arg5[%c0_11, %c0_12] : memref<1x32xf32, #tpu.memory_space<vmem>>, vector<1x32xf32>
    %15 = vector.shape_cast %14 : vector<1x32xf32> to vector<1x32xf32>
    %16 = vector.broadcast %15 : vector<1x32xf32> to vector<2x32xf32>
    %c0_13 = arith.constant 0 : index
    %c0_14 = arith.constant 0 : index
    %17 = vector.load %arg7[%c0_13, %c0_14] : memref<1x16xf32, #tpu.memory_space<vmem>>, vector<1x16xf32>
    %18 = vector.shape_cast %17 : vector<1x16xf32> to vector<1x16xf32>
    %19 = vector.broadcast %18 : vector<1x16xf32> to vector<16x16xf32>
    %cst_15 = arith.constant dense<0.000000e+00> : vector<16x32xf32>
    %20 = tpu.matmul %7, %8, %cst_15 {dimension_numbers = #tpu.dot_dimension_numbers<[1], [0], [0], [1], [0, 0, 1, 1], [], []>} : vector<16x32xf32>, vector<32x32xf32>, vector<16x32xf32> -> vector<16x32xf32>
    %21 = arith.addf %20, %13 : vector<16x32xf32>
    %cst_16 = arith.constant 0.000000e+00 : f32
    %22 = vector.broadcast %cst_16 : f32 to vector<2x32xf32>
    %23 = vector.extract_strided_slice %21 {offsets = [0, 0], sizes = [2, 32], strides = [1, 1]} : vector<16x32xf32> to vector<2x32xf32>
    %cst_17 = arith.constant 2.000000e-01 : f32
    %24 = vector.broadcast %cst_17 : f32 to vector<2x32xf32>
    %25 = arith.mulf %23, %24 : vector<2x32xf32>
    %cst_18 = arith.constant 8.000000e-01 : f32
    %26 = vector.broadcast %cst_18 : f32 to vector<2x32xf32>
    %27 = arith.mulf %22, %26 : vector<2x32xf32>
    %28 = arith.addf %25, %27 : vector<2x32xf32>
    %29 = math.tanh %28 : vector<2x32xf32>
    %cst_19 = arith.constant dense<0.000000e+00> : vector<2x32xf32>
    %30 = tpu.matmul %29, %9, %cst_19 {dimension_numbers = #tpu.dot_dimension_numbers<[1], [0], [0], [1], [0, 0, 1, 1], [], []>} : vector<2x32xf32>, vector<32x32xf32>, vector<2x32xf32> -> vector<2x32xf32>
    %31 = arith.addf %30, %16 : vector<2x32xf32>
    %32 = vector.extract_strided_slice %21 {offsets = [2, 0], sizes = [2, 32], strides = [1, 1]} : vector<16x32xf32> to vector<2x32xf32>
    %cst_20 = arith.constant 2.000000e-01 : f32
    %33 = vector.broadcast %cst_20 : f32 to vector<2x32xf32>
    %34 = arith.mulf %32, %33 : vector<2x32xf32>
    %cst_21 = arith.constant 8.000000e-01 : f32
    %35 = vector.broadcast %cst_21 : f32 to vector<2x32xf32>
    %36 = arith.mulf %31, %35 : vector<2x32xf32>
    %37 = arith.addf %34, %36 : vector<2x32xf32>
    %38 = math.tanh %37 : vector<2x32xf32>
    %cst_22 = arith.constant dense<0.000000e+00> : vector<2x32xf32>
    %39 = tpu.matmul %38, %9, %cst_22 {dimension_numbers = #tpu.dot_dimension_numbers<[1], [0], [0], [1], [0, 0, 1, 1], [], []>} : vector<2x32xf32>, vector<32x32xf32>, vector<2x32xf32> -> vector<2x32xf32>
    %40 = arith.addf %39, %16 : vector<2x32xf32>
    %41 = vector.extract_strided_slice %21 {offsets = [4, 0], sizes = [2, 32], strides = [1, 1]} : vector<16x32xf32> to vector<2x32xf32>
    %cst_23 = arith.constant 2.000000e-01 : f32
    %42 = vector.broadcast %cst_23 : f32 to vector<2x32xf32>
    %43 = arith.mulf %41, %42 : vector<2x32xf32>
    %cst_24 = arith.constant 8.000000e-01 : f32
    %44 = vector.broadcast %cst_24 : f32 to vector<2x32xf32>
    %45 = arith.mulf %40, %44 : vector<2x32xf32>
    %46 = arith.addf %43, %45 : vector<2x32xf32>
    %47 = math.tanh %46 : vector<2x32xf32>
    %cst_25 = arith.constant dense<0.000000e+00> : vector<2x32xf32>
    %48 = tpu.matmul %47, %9, %cst_25 {dimension_numbers = #tpu.dot_dimension_numbers<[1], [0], [0], [1], [0, 0, 1, 1], [], []>} : vector<2x32xf32>, vector<32x32xf32>, vector<2x32xf32> -> vector<2x32xf32>
    %49 = arith.addf %48, %16 : vector<2x32xf32>
    %50 = vector.extract_strided_slice %21 {offsets = [6, 0], sizes = [2, 32], strides = [1, 1]} : vector<16x32xf32> to vector<2x32xf32>
    %cst_26 = arith.constant 2.000000e-01 : f32
    %51 = vector.broadcast %cst_26 : f32 to vector<2x32xf32>
    %52 = arith.mulf %50, %51 : vector<2x32xf32>
    %cst_27 = arith.constant 8.000000e-01 : f32
    %53 = vector.broadcast %cst_27 : f32 to vector<2x32xf32>
    %54 = arith.mulf %49, %53 : vector<2x32xf32>
    %55 = arith.addf %52, %54 : vector<2x32xf32>
    %56 = math.tanh %55 : vector<2x32xf32>
    %cst_28 = arith.constant dense<0.000000e+00> : vector<2x32xf32>
    %57 = tpu.matmul %56, %9, %cst_28 {dimension_numbers = #tpu.dot_dimension_numbers<[1], [0], [0], [1], [0, 0, 1, 1], [], []>} : vector<2x32xf32>, vector<32x32xf32>, vector<2x32xf32> -> vector<2x32xf32>
    %58 = arith.addf %57, %16 : vector<2x32xf32>
    %59 = vector.extract_strided_slice %21 {offsets = [8, 0], sizes = [2, 32], strides = [1, 1]} : vector<16x32xf32> to vector<2x32xf32>
    %cst_29 = arith.constant 2.000000e-01 : f32
    %60 = vector.broadcast %cst_29 : f32 to vector<2x32xf32>
    %61 = arith.mulf %59, %60 : vector<2x32xf32>
    %cst_30 = arith.constant 8.000000e-01 : f32
    %62 = vector.broadcast %cst_30 : f32 to vector<2x32xf32>
    %63 = arith.mulf %58, %62 : vector<2x32xf32>
    %64 = arith.addf %61, %63 : vector<2x32xf32>
    %65 = math.tanh %64 : vector<2x32xf32>
    %cst_31 = arith.constant dense<0.000000e+00> : vector<2x32xf32>
    %66 = tpu.matmul %65, %9, %cst_31 {dimension_numbers = #tpu.dot_dimension_numbers<[1], [0], [0], [1], [0, 0, 1, 1], [], []>} : vector<2x32xf32>, vector<32x32xf32>, vector<2x32xf32> -> vector<2x32xf32>
    %67 = arith.addf %66, %16 : vector<2x32xf32>
    %68 = vector.extract_strided_slice %21 {offsets = [10, 0], sizes = [2, 32], strides = [1, 1]} : vector<16x32xf32> to vector<2x32xf32>
    %cst_32 = arith.constant 2.000000e-01 : f32
    %69 = vector.broadcast %cst_32 : f32 to vector<2x32xf32>
    %70 = arith.mulf %68, %69 : vector<2x32xf32>
    %cst_33 = arith.constant 8.000000e-01 : f32
    %71 = vector.broadcast %cst_33 : f32 to vector<2x32xf32>
    %72 = arith.mulf %67, %71 : vector<2x32xf32>
    %73 = arith.addf %70, %72 : vector<2x32xf32>
    %74 = math.tanh %73 : vector<2x32xf32>
    %cst_34 = arith.constant dense<0.000000e+00> : vector<2x32xf32>
    %75 = tpu.matmul %74, %9, %cst_34 {dimension_numbers = #tpu.dot_dimension_numbers<[1], [0], [0], [1], [0, 0, 1, 1], [], []>} : vector<2x32xf32>, vector<32x32xf32>, vector<2x32xf32> -> vector<2x32xf32>
    %76 = arith.addf %75, %16 : vector<2x32xf32>
    %77 = vector.extract_strided_slice %21 {offsets = [12, 0], sizes = [2, 32], strides = [1, 1]} : vector<16x32xf32> to vector<2x32xf32>
    %cst_35 = arith.constant 2.000000e-01 : f32
    %78 = vector.broadcast %cst_35 : f32 to vector<2x32xf32>
    %79 = arith.mulf %77, %78 : vector<2x32xf32>
    %cst_36 = arith.constant 8.000000e-01 : f32
    %80 = vector.broadcast %cst_36 : f32 to vector<2x32xf32>
    %81 = arith.mulf %76, %80 : vector<2x32xf32>
    %82 = arith.addf %79, %81 : vector<2x32xf32>
    %83 = math.tanh %82 : vector<2x32xf32>
    %cst_37 = arith.constant dense<0.000000e+00> : vector<2x32xf32>
    %84 = tpu.matmul %83, %9, %cst_37 {dimension_numbers = #tpu.dot_dimension_numbers<[1], [0], [0], [1], [0, 0, 1, 1], [], []>} : vector<2x32xf32>, vector<32x32xf32>, vector<2x32xf32> -> vector<2x32xf32>
    %85 = arith.addf %84, %16 : vector<2x32xf32>
    %86 = vector.extract_strided_slice %21 {offsets = [14, 0], sizes = [2, 32], strides = [1, 1]} : vector<16x32xf32> to vector<2x32xf32>
    %cst_38 = arith.constant 2.000000e-01 : f32
    %87 = vector.broadcast %cst_38 : f32 to vector<2x32xf32>
    %88 = arith.mulf %86, %87 : vector<2x32xf32>
    %cst_39 = arith.constant 8.000000e-01 : f32
    %89 = vector.broadcast %cst_39 : f32 to vector<2x32xf32>
    %90 = arith.mulf %85, %89 : vector<2x32xf32>
    %91 = arith.addf %88, %90 : vector<2x32xf32>
    %92 = math.tanh %91 : vector<2x32xf32>
    %cst_40 = arith.constant dense<0.000000e+00> : vector<2x32xf32>
    %93 = tpu.matmul %92, %9, %cst_40 {dimension_numbers = #tpu.dot_dimension_numbers<[1], [0], [0], [1], [0, 0, 1, 1], [], []>} : vector<2x32xf32>, vector<32x32xf32>, vector<2x32xf32> -> vector<2x32xf32>
    %94 = arith.addf %93, %16 : vector<2x32xf32>
    %c0_41 = arith.constant 0 : index
    %c0_42 = arith.constant 0 : index
    %95 = vector.load %arg10[%c0_41, %c0_42] : memref<2x32xf32, #tpu.memory_space<vmem>>, vector<2x32xf32>
    tpu.vector_store %arg10[%c0_41, %c0_42], %94 {strides = array<i32>} : memref<2x32xf32, #tpu.memory_space<vmem>>, vector<2x32xf32>,
    %96 = tpu.concatenate %31, %40, %49, %58, %67, %76, %85, %94 in 1 : vector<2x32xf32>, vector<2x32xf32>, vector<2x32xf32>, vector<2x32xf32>, vector<2x32xf32>, vector<2x32xf32>, vector<2x32xf32>, vector<2x32xf32> -> vector<2x256xf32>
    %c0_43 = arith.constant 0 : index
    %c0_44 = arith.constant 0 : index
    %97 = vector.load %arg9[%c0_43, %c0_44] : memref<2x256xf32, #tpu.memory_space<vmem>>, vector<2x256xf32>
    tpu.vector_store %arg9[%c0_43, %c0_44], %96 {strides = array<i32>} : memref<2x256xf32, #tpu.memory_space<vmem>>, vector<2x256xf32>,
    %98 = tpu.concatenate %31, %40, %49, %58, %67, %76, %85, %94 in 0 : vector<2x32xf32>, vector<2x32xf32>, vector<2x32xf32>, vector<2x32xf32>, vector<2x32xf32>, vector<2x32xf32>, vector<2x32xf32>, vector<2x32xf32> -> vector<16x32xf32>
    %cst_45 = arith.constant dense<0.000000e+00> : vector<16x16xf32>
    %99 = tpu.matmul %98, %10, %cst_45 {dimension_numbers = #tpu.dot_dimension_numbers<[1], [0], [0], [1], [0, 0, 1, 1], [], []>} : vector<16x32xf32>, vector<32x16xf32>, vector<16x16xf32> -> vector<16x16xf32>
    %100 = arith.addf %99, %19 : vector<16x16xf32>
    %cst_46 = arith.constant dense<0xFF800000> : vector<16xf32>
    %101 = vector.multi_reduction <maximumf>, %100, %cst_46 [1] : vector<16x16xf32> to vector<16xf32>
    %102 = vector.shape_cast %101 : vector<16xf32> to vector<16x1xf32>
    %103 = tpu.iota {dimensions = array<i32: 1>} : vector<16x16xi32>
    %104 = vector.broadcast %102 : vector<16x1xf32> to vector<16x16xf32>
    %105 = arith.cmpf oeq, %100, %104 : vector<16x16xf32>
    %c16_i32 = arith.constant 16 : i32
    %106 = vector.broadcast %c16_i32 : i32 to vector<16x16xi32>
    %107 = arith.select %105, %103, %106 : vector<16x16xi1>, vector<16x16xi32>
    %cst_47 = arith.constant dense<2147483647> : vector<16xi32>
    %108 = vector.multi_reduction <minsi>, %107, %cst_47 [1] : vector<16x16xi32> to vector<16xi32>
    %109 = vector.shape_cast %108 : vector<16xi32> to vector<16x1xi32>
    %c0_48 = arith.constant 0 : index
    %c0_49 = arith.constant 0 : index
    %110 = vector.load %arg8[%c0_48, %c0_49] : memref<16x1xi32, #tpu.memory_space<vmem>>, vector<16x1xi32>
    tpu.vector_store %arg8[%c0_48, %c0_49], %109 {strides = array<i32>} : memref<16x1xi32, #tpu.memory_space<vmem>>, vector<16x1xi32>,
    return
  }
}

</mosaic_0001>

<bundles_post_ra>
// kernel: tpu_custom_call.1
= control target key start
LH: loop header
LB: loop body
LE: loop exit
PB: predicated region body
PF: predicated region fallthrough
CT: control target
= control target key end

     0   :  { %16 = vsyncpa [#allocation3], 0  ;;  %v1418_v2 = vmov 0   ;;  %s1752_s0 = inlined_call_operand.vmem [shape: s32[16,1], index: 0, kind: input, shape index: {}]   ;;  %s1753_s1 = inlined_call_operand.vmem [shape: f32[128,32], index: 1, kind: input, shape index: {}]   ;;  %s1754_s2 = inlined_call_operand.vmem [shape: f32[32,32], index: 2, kind: input, shape index: {}]   ;;  %s1755_s3 = inlined_call_operand.vmem [shape: f32[1,32], index: 3, kind: input, shape index: {}]   ;;  %s1756_s4 = inlined_call_operand.vmem [shape: f32[32,32], index: 4, kind: input, shape index: {}]   ;;  %s1757_s5 = inlined_call_operand.vmem [shape: f32[1,32], index: 5, kind: input, shape index: {}]   ;;  %s1758_s6 = inlined_call_operand.vmem [shape: f32[32,16], index: 6, kind: input, shape index: {}]   ;;  %s1759_s7 = inlined_call_operand.vmem [shape: f32[1,16], index: 7, kind: input, shape index: {}]   ;;  %s1760_s8 = inlined_call_operand.vmem [shape: s32[16,1], index: 8, kind: output, shape index: {0}]   ;;  %s1761_s9 = inlined_call_operand.hbm [shape: f32[2,256], index: 9, kind: output, shape index: {1}]   ;;  %s1762_s10 = inlined_call_operand.hbm [shape: f32[2,32], index: 10, kind: output, shape index: {2}]  }
   0x1   :  { %v34_v0 = vld [vmem:[%s1752_s0] sm:$0xff]  ;;  %v65_v1 = vld [vmem:[%s1753_s1 + $0x78] sm:$0xff]  ;;  %1357 = vset.pattern.permute.xlu0 %v1418_v2  ;;  %v64_v3 = vld [vmem:[%s1753_s1 + $0x70] sm:$0xff] }
   0x2   :  { %1203 = vmatprep.subr.mxu0 %v65_v1  ;;  %39 = vperm.xlu0 %1357, %v34_v0   ;;  %v63_v4 = vld [vmem:[%s1753_s1 + $0x68] sm:$0xff]  ;;  %v62_v6 = vld [vmem:[%s1753_s1 + $0x60] sm:$0xff]  ;;  %v61_v7 = vld [vmem:[%s1753_s1 + $0x58] sm:$0xff] }
   0x3   :  { %1204 = vmatpush3.msra.mxu0 %v65_v1  ;;  %v35_v5 = vld [vmem:[%s1752_s0 + $0x8] sm:$0xff]  ;;  %v144_v8 = vld [vmem:[%s1754_s2 + $0x18] sm:$0xff]  ;;  %v143_v9 = vld [vmem:[%s1754_s2 + $0x10] sm:$0xff] }
   0x4   :  { %1205 = vmatprep.subr.mxu0 %v64_v3 }
   0x5   :  { %1206 = vmatpush3.msra.mxu0 %v64_v3 }
   0x6   :  { %1207 = vmatprep.subr.mxu0 %v63_v4  ;;  %42 = vperm.xlu0 %1357, %v35_v5  }
   0x7   :  { %1208 = vmatpush3.msra.mxu0 %v63_v4 }
   0x8   :  { %17 = vsyncpa [#allocation5], 0  ;;  %1209 = vmatprep.subr.mxu0 %v62_v6  ;;  %1238 = vmatprep.subr.mxu1 %v144_v8  ;;  %v60_v10 = vld [vmem:[%s1753_s1 + $0x50] sm:$0xff]  ;;  %v59_v11 = vld [vmem:[%s1753_s1 + $0x48] sm:$0xff]  ;;  %v36_v21 = vlaneseq  ;;  %v1419_v24 = vmov 1.0   ;;  %vm174_vm2 = vcmask 261120  }
   0x9   :  { %1210 = vmatpush3.msra.mxu0 %v62_v6  ;;  %1239 = vmatpush3.msra.mxu1 %v144_v8  ;;  %v58_v12 = vld [vmem:[%s1753_s1 + $0x40] sm:$0xff]  ;;  %v57_v13 = vld [vmem:[%s1753_s1 + $0x38] sm:$0xff]  ;;  %v56_v14 = vld [vmem:[%s1753_s1 + $0x30] sm:$0xff]  ;;  %v1420_v31 = vmov 0.0   ;;  %vm1421_vm3 = vmmov 0   ;;  %vm947_vm4 = vcmask 1041408  }
   0xa   :  { %1211 = vmatprep.subr.mxu0 %v61_v7  ;;  %1240 = vmatprep.subr.mxu1 %v143_v9  ;;  %v55_v15 = vld [vmem:[%s1753_s1 + $0x28] sm:$0xff]  ;;  %v54_v16 = vld [vmem:[%s1753_s1 + $0x20] sm:$0xff]  ;;  %v53_v17 = vld [vmem:[%s1753_s1 + $0x18] sm:$0xff]  ;;  %v1542_v22 = vand.u32 127, %v36_v21  ;;  %vm949_vm5 = vcmask 1043456   ;;  %vm951_vm6 = vcmask 1045504  }
   0xb   :  { %1212 = vmatpush3.msra.mxu0 %v61_v7  ;;  %1241 = vmatpush3.msra.mxu1 %v143_v9  ;;  %v52_v18 = vld [vmem:[%s1753_s1 + $0x10] sm:$0xff]  ;;  %v51_v19 = vld [vmem:[%s1753_s1 + $0x8] sm:$0xff]  ;;  %v50_v20 = vld [vmem:[%s1753_s1] sm:$0xff]  ;;  %vm889_vm7 = vcmask 254976   ;;  %vm1037_vm8 = vcmask 130048   ;;  %s1423_s0 = smov 64  }
   0xc   :  { %1213 = vmatprep.subr.mxu0 %v60_v10  ;;  %v142_v26 = vld [vmem:[%s1754_s2 + $0x8] sm:$0xff]  ;;  %v141_v27 = vld [vmem:[%s1754_s2] sm:$0xff]  ;;  %v1557_v30 = vld [vmem:[%s1756_s4 + $0x18] sm:$0xff]  ;;  %s1424_s11 = smov 96   ;;  %s1425_s12 = smov [#allocation4]  }
   0xd   :  { %1214 = vmatpush3.msra.mxu0 %v60_v10  ;;  %1242 = vmatprep.subr.mxu1 %v142_v26  ;;  %v1563_v32 = vld [vmem:[%s1756_s4 + $0x10] sm:$0xff]  ;;  %v1573_v33 = vld [vmem:[%s1756_s4 + $0x8] sm:$0xff]  ;;  %v1582_v34 = vld [vmem:[%s1756_s4] sm:$0xff]  ;;  %s1099_s1 = sshll.u32 %s1425_s12, 4  ;;  %s1100_s1 = int_to_ptr.vmem [resolvable:$true] %s1099_s1 }
   0xe   :  { %1215 = vmatprep.subr.mxu0 %v59_v11  ;;  %1243 = vmatpush3.msra.mxu1 %v142_v26  ;;  %v1117_v35 = vld [vmem:[%s1755_s3] ss:$0 sm:$0xff]  ;;  %s1374_s13 = scalar_lea.vmem %s1100_s1, 32  ;;  %p1379_p1 = scmp.lt.s32.totalorder %s1100_s1, %s1100_s1 }
   0xf   :  { %1216 = vmatpush3.msra.mxu0 %v59_v11  ;;  %1244 = vmatprep.subr.mxu1 %v141_v27  ;;  %v1615_v42 = vld [vmem:[%s1757_s5] ss:$0 sm:$0xff]  ;;  %p1375_p0 = scmp.ne.s32.totalorder %s1100_s1, %s1374_s13  ;;  %p1380_p2 = scmp.lt.s32.totalorder %s1374_s13, %s1374_s13 }
  0x10   :  { %1217 = vmatprep.subr.mxu0 %v58_v12  ;;  %1245 = vmatpush3.msra.mxu1 %v141_v27 }
  0x11   :  { %1218 = vmatpush3.msra.mxu0 %v58_v12  ;;  %1249 = vmatprep.subr.mxu1 %v1420_v31  ;;  %p1381_p3 = por %p1380_p2, %p1379_p1 }
  0x12   :  { %1219 = vmatprep.subr.mxu0 %v57_v13 }
  0x13   :  { %1220 = vmatpush3.msra.mxu0 %v57_v13  ;;  %p1382_p4 = pnand %p1381_p3, %p1375_p0 }
  0x14   :  { %1221 = vmatprep.subr.mxu0 %v56_v14 }
  0x15   :  { %1222 = vmatpush3.msra.mxu0 %v56_v14 }
  0x16   :  { %1223 = vmatprep.subr.mxu0 %v55_v15 }
  0x17   :  { %1224 = vmatpush3.msra.mxu0 %v55_v15 }
  0x18   :  { %1225 = vmatprep.subr.mxu0 %v54_v16 }
  0x19   :  { %1226 = vmatpush3.msra.mxu0 %v54_v16 }
  0x1a   :  { %1227 = vmatprep.subr.mxu0 %v53_v17 }
  0x1b   :  { %1228 = vmatpush3.msra.mxu0 %v53_v17 }
  0x1c   :  { %1229 = vmatprep.subr.mxu0 %v52_v18 }
  0x1d   :  { %1230 = vmatpush3.msra.mxu0 %v52_v18 }
  0x1e   :  { %1231 = vmatprep.subr.mxu0 %v51_v19 }
  0x1f   :  { %1232 = vmatpush3.msra.mxu0 %v51_v19 }
  0x20   :  { %1233 = vmatprep.subr.mxu0 %v50_v20 }
  0x21   :  { %1234 = vmatpush3.msra.mxu0 %v50_v20 }
  0x22   :  { %1282 = vmatprep.subr.mxu0 %v1420_v31 }
  0x7d   :  { %v40_v23 = vpop.permute.xlu0 %39 }
  0x7e   :  { %vm44_vm0 = vcmp.eq.s32.totalorder %v1542_v22, %v40_v23 }
  0x7f   :  { %1235 = vmatprep.mubr.msk.f32.mxu0 %vm44_vm0, %v1419_v24 }
  0x81   :  { %v43_v25 = vpop.permute.xlu0 %42 }
  0x82   :  { %vm45_vm1 = vcmp.eq.s32.totalorder %v1542_v22, %v43_v25 }
  0x83   :  { %1236 = vmatmul.mubr.msk.f32.vlgmr.msra.gmra.mxu0 %vm45_vm1, %v1419_v24 }
  0x84   :  { %1283 = vmatpush3.msra.mxu0 %v1557_v30  ;;  %1290 = vmatprep.mubr.msk.f32.mxu0 %vm1421_vm3, %v1420_v31 }
  0x85   :  { %1284 = vmatprep.subr.mxu0 %v1420_v31 }
  0x86   :  { %1285 = vmatpush3.msra.mxu0 %v1563_v32 }
  0x87   :  { %1286 = vmatprep.subr.mxu0 %v1420_v31 }
  0x88   :  { %1287 = vmatpush3.msra.mxu0 %v1573_v33 }
  0x89   :  { %1288 = vmatprep.subr.mxu0 %v1420_v31 }
  0x8a   :  { %1289 = vmatpush3.msra.mxu0 %v1582_v34 }
  0x8b   :  { %1304 = vmatprep.subr.mxu0 %v1420_v31 }
 0x143   :  { %v1237_v28 = vpop.f32.mrf.mxu0 }
 0x145   :  { %v132_v29 = vpop.f32.mrf.mxu0 }
 0x146   :  { %1246 = vmatprep.mubr.msk.f32.mxu1 %vm174_vm2, %v132_v29 }
 0x147   :  { %1247 = vmatmul.mubr.msk.f32.vlgmr.msra.gmra.mxu1 %vm174_vm2, %v1237_v28 }
 0x148   :  { %1257 = vmatprep.mubr.msk.f32.mxu1 %vm1421_vm3, %v1420_v31  ;;  %1250 = vmatpush3.msra.mxu1 %v1557_v30 }
 0x149   :  { %1251 = vmatprep.subr.mxu1 %v1420_v31 }
 0x14a   :  { %1252 = vmatpush3.msra.mxu1 %v1563_v32 }
 0x14b   :  { %1253 = vmatprep.subr.mxu1 %v1420_v31 }
 0x14c   :  { %1254 = vmatpush3.msra.mxu1 %v1573_v33 }
 0x14d   :  { %1255 = vmatprep.subr.mxu1 %v1420_v31 }
 0x14e   :  { %1256 = vmatpush3.msra.mxu1 %v1582_v34 }
 0x14f   :  { %1260 = vmatprep.subr.mxu1 %v1420_v31 }
 0x207   :  { %v1248_v36 = vpop.f32.mrf.mxu1 }
 0x208   :  { %v1599_v37 = vadd.f32 %v1248_v36, %v1117_v35 }
 0x209   :  { %v247_v38 = vpop.f32.mrf.mxu1 }
 0x20a   :  { %v248_v39 = vadd.f32 %v1117_v35, %v247_v38  ;;  %v572_v6 = vmul.f32 0.2, %v1599_v37 }
 0x20c   :  { %v256_v40 = vmul.f32 0.2, %v248_v39 }
 0x20e   :  { %1358 = vtanh.f32 %v256_v40 }
 0x21b   :  { %v1359_v41 = vpop.eup %1358 }
 0x21c   :  { %1258 = vmatmul.mubr.msk.f32.vlgmr.msra.gmra.mxu1 %vm174_vm2, %v1359_v41 }
 0x21d   :  { %1261 = vmatpush3.msra.mxu1 %v1557_v30  ;;  %1268 = vmatprep.mubr.msk.f32.mxu1 %vm1421_vm3, %v1420_v31 }
 0x21e   :  { %1262 = vmatprep.subr.mxu1 %v1420_v31 }
 0x21f   :  { %1263 = vmatpush3.msra.mxu1 %v1563_v32 }
 0x220   :  { %1264 = vmatprep.subr.mxu1 %v1420_v31 }
 0x221   :  { %1265 = vmatpush3.msra.mxu1 %v1573_v33 }
 0x222   :  { %1266 = vmatprep.subr.mxu1 %v1420_v31 }
 0x223   :  { %1267 = vmatpush3.msra.mxu1 %v1582_v34 }
 0x224   :  { %1271 = vmatprep.subr.mxu1 %v1420_v31 }
 0x2dc   :  { %v328_v43 = vpop.f32.mrf.mxu1 }
 0x2dd   :  { %v1618_v44 = vadd.f32 %v1615_v42, %v328_v43  ;;  %v151_v43 = vld [vmem:[%s1758_s6 + $0x10] sm:$0xff] }
 0x2de   :  { %v1259_v45 = vpop.f32.mrf.mxu1 }
 0x2df   :  { %v332_v46 = vmul.f32 0.8, %v1618_v44  ;;  %v150_v45 = vld [vmem:[%s1758_s6 + $0x8] sm:$0xff] }
 0x2e1   :  { %v334_v47 = vrot.slane %v332_v46, 6  ;;  %v149_v46 = vld [vmem:[%s1758_s6] sm:$0xff] }
 0x2e3   :  { %v336_v48 = vadd.f32 %v334_v47, %v256_v40 }
 0x2e5   :  { %1360 = vtanh.f32 %v336_v48 }
 0x2f2   :  { %v1361_v49 = vpop.eup %1360 }
 0x2f3   :  { %v339_v50 = vrot.slane %v1361_v49, 2 }
 0x2f5   :  { %1269 = vmatmul.mubr.msk.f32.vlgmr.msra.gmra.mxu1 %vm174_vm2, %v339_v50 }
 0x2f6   :  { %1272 = vmatpush3.msra.mxu1 %v1557_v30  ;;  %1279 = vmatprep.mubr.msk.f32.mxu1 %vm1421_vm3, %v1420_v31 }
 0x2f7   :  { %1273 = vmatprep.subr.mxu1 %v1420_v31 }
 0x2f8   :  { %1274 = vmatpush3.msra.mxu1 %v1563_v32 }
 0x2f9   :  { %1275 = vmatprep.subr.mxu1 %v1420_v31 }
 0x2fa   :  { %1276 = vmatpush3.msra.mxu1 %v1573_v33 }
 0x2fb   :  { %1277 = vmatprep.subr.mxu1 %v1420_v31 }
 0x2fc   :  { %1278 = vmatpush3.msra.mxu1 %v1582_v34 }
 0x2fd   :  { %1293 = vmatprep.subr.mxu1 %v1420_v31 }
 0x3b5   :  { %v408_v51 = vpop.f32.mrf.mxu1 }
 0x3b6   :  { %v1633_v52 = vadd.f32 %v1615_v42, %v408_v51 }
 0x3b7   :  { %v1270_v53 = vpop.f32.mrf.mxu1 }
 0x3b8   :  { %v412_v54 = vmul.f32 0.8, %v1633_v52  ;;  %v935_v25 = vrot.slane %v1633_v52, 6 }
 0x3ba   :  { %v414_v55 = vrot.slane %v412_v54, 4 }
 0x3bc   :  { %v416_v56 = vadd.f32 %v414_v55, %v256_v40 }
 0x3be   :  { %1362 = vtanh.f32 %v416_v56 }
 0x3cb   :  { %v1363_v57 = vpop.eup %1362 }
 0x3cc   :  { %v419_v58 = vrot.slane %v1363_v57, 4 }
 0x3ce   :  { %1280 = vmatmul.mubr.msk.f32.vlgmr.msra.gmra.mxu1 %vm174_vm2, %v419_v58  ;;  %v1119_v58 = vld [vmem:[%s1759_s7] ss:$0 sm:$0xff]  ;;  %s1422_s7 = smov 32  }
 0x3cf   :  { %1294 = vmatpush3.msra.mxu1 %v1557_v30  ;;  %1301 = vmatprep.mubr.msk.f32.mxu1 %vm1421_vm3, %v1420_v31 }
 0x3d0   :  { %1295 = vmatprep.subr.mxu1 %v1420_v31 }
 0x3d1   :  { %1296 = vmatpush3.msra.mxu1 %v1563_v32 }
 0x3d2   :  { %1297 = vmatprep.subr.mxu1 %v1420_v31 }
 0x3d3   :  { %1298 = vmatpush3.msra.mxu1 %v1573_v33 }
 0x3d4   :  { %1299 = vmatprep.subr.mxu1 %v1420_v31 }
 0x3d5   :  { %1300 = vmatpush3.msra.mxu1 %v1582_v34 }
 0x3d6   :  { %1315 = vmatprep.subr.mxu1 %v1420_v31 }
 0x48e   :  { %v488_v59 = vpop.f32.mrf.mxu1 }
 0x48f   :  { %v1648_v60 = vadd.f32 %v1615_v42, %v488_v59 }
 0x490   :  { %v1281_v61 = vpop.f32.mrf.mxu1 }
 0x491   :  { %v492_v62 = vmul.f32 0.8, %v1648_v60  ;;  %v937_v26 = vrot.slane %v1648_v60, 4 }
 0x493   :  { %v494_v63 = vrot.slane %v492_v62, 2 }
 0x495   :  { %v496_v0 = vadd.f32 %v494_v63, %v256_v40 }
 0x497   :  { %1364 = vtanh.f32 %v496_v0 }
 0x4a4   :  { %v1365_v1 = vpop.eup %1364 }
 0x4a5   :  { %v499_v2 = vrot.slane %v1365_v1, 6 }
 0x4a7   :  { %1291 = vmatmul.mubr.msk.f32.vlgmr.msra.gmra.mxu0 %vm174_vm2, %v499_v2 }
 0x4a8   :  { %1305 = vmatpush3.msra.mxu0 %v1557_v30  ;;  %1312 = vmatprep.mubr.msk.f32.mxu0 %vm1421_vm3, %v1420_v31 }
 0x4a9   :  { %1306 = vmatprep.subr.mxu0 %v1420_v31 }
 0x4aa   :  { %1307 = vmatpush3.msra.mxu0 %v1563_v32 }
 0x4ab   :  { %1308 = vmatprep.subr.mxu0 %v1420_v31 }
 0x4ac   :  { %1309 = vmatpush3.msra.mxu0 %v1573_v33 }
 0x4ad   :  { %1310 = vmatprep.subr.mxu0 %v1420_v31 }
 0x4ae   :  { %1311 = vmatpush3.msra.mxu0 %v1582_v34 }
 0x4af   :  { %1326 = vmatprep.subr.mxu0 %v1420_v31 }
 0x567   :  { %v568_v3 = vpop.f32.mrf.mxu0 }
 0x568   :  { %v1663_v4 = vadd.f32 %v1615_v42, %v568_v3 }
 0x569   :  { %v1292_v5 = vpop.f32.mrf.mxu0 }
 0x56a   :  { %v573_v7 = vmul.f32 0.8, %v1663_v4  ;;  %v939_v27 = vrot.slane %v1663_v4, 2 }
 0x56c   :  { %v574_v8 = vadd.f32 %v573_v7, %v572_v6 }
 0x56e   :  { %1366 = vtanh.f32 %v574_v8 }
 0x57b   :  { %v1367_v9 = vpop.eup %1366 }
 0x57c   :  { %1302 = vmatmul.mubr.msk.f32.vlgmr.msra.gmra.mxu1 %vm174_vm2, %v1367_v9 }
 0x57d   :  { %1316 = vmatpush3.msra.mxu1 %v1557_v30  ;;  %1323 = vmatprep.mubr.msk.f32.mxu1 %vm1421_vm3, %v1420_v31 }
 0x57e   :  { %1317 = vmatprep.subr.mxu1 %v1420_v31 }
 0x57f   :  { %1318 = vmatpush3.msra.mxu1 %v1563_v32 }
 0x580   :  { %1319 = vmatprep.subr.mxu1 %v1420_v31 }
 0x581   :  { %1320 = vmatpush3.msra.mxu1 %v1573_v33 }
 0x582   :  { %1321 = vmatprep.subr.mxu1 %v1420_v31 }
 0x583   :  { %1322 = vmatpush3.msra.mxu1 %v1582_v34 }
 0x63c   :  { %v645_v10 = vpop.f32.mrf.mxu1 }
 0x63d   :  { %v1678_v11 = vadd.f32 %v1615_v42, %v645_v10 }
 0x63e   :  { %v1303_v12 = vpop.f32.mrf.mxu1 }
 0x63f   :  { %v649_v13 = vmul.f32 0.8, %v1678_v11 }
 0x641   :  { %v651_v14 = vrot.slane %v649_v13, 6 }
 0x643   :  { %v653_v15 = vadd.f32 %v651_v14, %v572_v6 }
 0x645   :  { %1368 = vtanh.f32 %v653_v15 }
 0x652   :  { %v1369_v16 = vpop.eup %1368 }
 0x653   :  { %v656_v17 = vrot.slane %v1369_v16, 2 }
 0x655   :  { %1313 = vmatmul.mubr.msk.f32.vlgmr.msra.gmra.mxu0 %vm174_vm2, %v656_v17 }
 0x656   :  { %1327 = vmatpush3.msra.mxu0 %v1557_v30  ;;  %1334 = vmatprep.mubr.msk.f32.mxu0 %vm1421_vm3, %v1420_v31  ;;  %v948_v30 = vsel %vm947_vm4, %v1618_v44, %v935_v25 }
 0x657   :  { %1328 = vmatprep.subr.mxu0 %v1420_v31 }
 0x658   :  { %1329 = vmatpush3.msra.mxu0 %v1563_v32 }
 0x659   :  { %1330 = vmatprep.subr.mxu0 %v1420_v31 }
 0x65a   :  { %1331 = vmatpush3.msra.mxu0 %v1573_v33  ;;  %v152_v33 = vld [vmem:[%s1758_s6 + $0x18] sm:$0xff] }
 0x65b   :  { %1332 = vmatprep.subr.mxu0 %v1420_v31  ;;  %v950_v31 = vsel %vm949_vm5, %v948_v30, %v937_v26  ;;  %1337 = vmatprep.subr.mxu1 %v152_v33 }
 0x65c   :  { %1333 = vmatpush3.msra.mxu0 %v1582_v34  ;;  %v952_v32 = vsel %vm951_vm6, %v950_v31, %v939_v27 }
 0x715   :  { %v725_v18 = vpop.f32.mrf.mxu0 }
 0x716   :  { %v1692_v19 = vadd.f32 %v1615_v42, %v725_v18 }
 0x717   :  { %v1314_v20 = vpop.f32.mrf.mxu0 }
 0x718   :  { %v729_v21 = vmul.f32 0.8, %v1692_v19  ;;  %v941_v47 = vrot.slane %v1692_v19, 6 }
 0x71a   :  { %v731_v23 = vrot.slane %v729_v21, 4  ;;  %v953_v53 = vsel %vm947_vm4, %v1678_v11, %v941_v47 }
 0x71c   :  { %v733_v24 = vadd.f32 %v731_v23, %v572_v6 }
 0x71e   :  { %1370 = vtanh.f32 %v733_v24 }
 0x72b   :  { %v1371_v28 = vpop.eup %1370 }
 0x72c   :  { %v736_v29 = vrot.slane %v1371_v28, 4 }
 0x72e   :  { %1324 = vmatmul.mubr.msk.f32.vlgmr.msra.gmra.mxu1 %vm174_vm2, %v736_v29 }
 0x72f   :  { %1345 = vmatprep.mubr.msk.f32.mxu1 %vm174_vm2, %v952_v32  ;;  %1338 = vmatpush3.msra.mxu1 %v152_v33 }
 0x730   :  { %1339 = vmatprep.subr.mxu1 %v151_v43 }
 0x731   :  { %1340 = vmatpush3.msra.mxu1 %v151_v43 }
 0x732   :  { %1341 = vmatprep.subr.mxu1 %v150_v45 }
 0x733   :  { %1342 = vmatpush3.msra.mxu1 %v150_v45 }
 0x734   :  { %1343 = vmatprep.subr.mxu1 %v149_v46 }
 0x735   :  { %1344 = vmatpush3.msra.mxu1 %v149_v46 }
 0x7ee   :  { %v805_v34 = vpop.f32.mrf.mxu1 }
 0x7ef   :  { %v806_v35 = vadd.f32 %v1615_v42, %v805_v34 }
 0x7f0   :  { %v1325_v36 = vpop.f32.mrf.mxu1 }
 0x7f1   :  { %v809_v37 = vmul.f32 0.8, %v806_v35  ;;  %v943_v48 = vrot.slane %v806_v35, 4 }
 0x7f3   :  { %v811_v38 = vrot.slane %v809_v37, 2  ;;  %v954_v55 = vsel %vm949_vm5, %v953_v53, %v943_v48 }
 0x7f5   :  { %v813_v39 = vadd.f32 %v811_v38, %v572_v6 }
 0x7f7   :  { %1372 = vtanh.f32 %v813_v39 }
 0x804   :  { %v1373_v40 = vpop.eup %1372 }
 0x805   :  { %v816_v41 = vrot.slane %v1373_v40, 6 }
 0x807   :  { %1335 = vmatmul.mubr.msk.f32.vlgmr.msra.gmra.mxu0 %vm174_vm2, %v816_v41 }
 0x8c7   :  { %v885_v49 = vpop.f32.mrf.mxu0 }
 0x8c8   :  { %v886_v50 = vadd.f32 %v1615_v42, %v885_v49 }
 0x8c9   :  { %v1336_v51 = vpop.f32.mrf.mxu0 }
 0x8ca   :  { %v945_v54 = vrot.slane %v886_v50, 2  ;;  %890 = vst.msk [vmem:[#allocation4] sm:$0x3] %vm889_vm7, %v886_v50 }
 0x8cc   :  { %v955_v56 = vsel %vm951_vm6, %v954_v55, %v945_v54 }
 0x8cd   :  { %1346 = vmatmul.mubr.msk.f32.vlgmr.msra.gmra.mxu1 %vm174_vm2, %v955_v56 }
 0x98d   :  { %v1347_v57 = vpop.f32.mrf.mxu1 }
 0x98e   :  { %v1034_v42 = vadd.f32 %v1347_v57, %v1119_v58 }
 0x98f   :  { %v1028_v59 = vpop.f32.mrf.mxu1 }
 0x990   :  { %v1029_v61 = vadd.f32 %v1119_v58, %v1028_v59  ;;  %v1041_v63 = vsel %vm1037_vm8, %v1034_v42, -inf }
 0x992   :  { %v1038_v62 = vsel %vm1037_vm8, %v1029_v61, -inf }
 0x993   :  { %1039 = vmax.xlane.f32.xlu1 %v1038_v62 }
 0x997   :  { %1042 = vmax.xlane.f32.xlu1 %v1041_v63 }
 0xa1c   :  { %v1040_v0 = vpop.xlane.xlu1 %1039 }
 0xa1d   :  { %vm1044_vm9 = vcmp.eq.f32.partialorder %v1029_v61, %v1040_v0 }
 0xa1e   :  { %v1046_v1 = vsel %vm1044_vm9, %v1542_v22, 16 }
 0xa1f   :  { %v1048_v2 = vsel %vm1037_vm8, %v1046_v1, 2147483647 }
 0xa20   :  { %v1043_v3 = vpop.xlane.xlu1 %1042  ;;  %v1050_v5 = vshra.s32 %v1048_v2, 16  ;;  %v1049_v15 = vand.u32 65535, %v1048_v2 }
 0xa21   :  { %vm1045_vm10 = vcmp.eq.f32.partialorder %v1034_v42, %v1043_v3 }
 0xa22   :  { %v1047_v6 = vsel %vm1045_vm10, %v1542_v22, 16  ;;  %v1052_v7 = vcvt.s32.f32 %v1050_v5  ;;  %v1051_v17 = vcvt.s32.f32 %v1049_v15 }
 0xa23   :  { %v1063_v8 = vsel %vm1037_vm8, %v1047_v6, 2147483647 }
 0xa24   :  { %1053 = vmin.xlane.f32.xlu0 %v1052_v7  ;;  %v1065_v9 = vshra.s32 %v1063_v8, 16  ;;  %v1064_v12 = vand.u32 65535, %v1063_v8 }
 0xa26   :  { %v1067_v10 = vcvt.s32.f32 %v1065_v9  ;;  %v1066_v14 = vcvt.s32.f32 %v1064_v12 }
 0xa28   :  { %1068 = vmin.xlane.f32.xlu1 %v1067_v10 }
 0xa39   :  { %892 = vrot.lane.b32.xlu1 %v1633_v52, %s1422_s7 }
 0xa3a   :  { %896 = vrot.lane.b32.xlu0 %v1648_v60, %s1423_s0 }
 0xa3d   :  { %904 = vrot.lane.b32.xlu1 %v1692_v19, %s1422_s7 }
 0xa41   :  { %908 = vrot.lane.b32.xlu1 %v806_v35, %s1423_s0 }
 0xa45   :  { %900 = vrot.lane.b32.xlu1 %v1663_v4, %s1424_s11 }
 0xaad   :  { %v1054_v22 = vpop.xlane.xlu0 %1053 }
 0xaae   :  { %vm1055_vm12 = vcmp.eq.f32.partialorder %v1052_v7, %v1054_v22 }
 0xaaf   :  { %v1056_v52 = vsel %vm1055_vm12, %v1051_v17, inf }
 0xab1   :  { %v1069_v13 = vpop.xlane.xlu1 %1068 }
 0xab2   :  { %vm1070_vm11 = vcmp.eq.f32.partialorder %v1067_v10, %v1069_v13 }
 0xab3   :  { %v1071_v16 = vsel %vm1070_vm11, %v1066_v14, inf }
 0xab4   :  { %1072 = vmin.xlane.f32.xlu1 %v1071_v16 }
 0xab8   :  { %1057 = vmin.xlane.f32.xlu1 %v1056_v52 }
 0xac9   :  { %912 = vrot.lane.b32.xlu1 %v886_v50, %s1424_s11 }
 0xaca   :  { %1385 = shalt.err (!%p1382_p4)
}
 0xacb   :  { %1102 = dma.vmem_to_hbm [thread:$0]  %s1100_s1, 32, %s1762_s10, [#allocation5]   ;;  %v893_v60 = vpop.permute.xlu1 %892  ;;  %v1075_v20 = vcvt.f32.s32 %v1069_v13  ;;  %v1060_v23 = vcvt.f32.s32 %v1054_v22  ;;  %vm1078_vm13 = vcmask 7168   ;;  %vm916_vm14 = vcmask 523264   ;;  %v897_v31 = vpop.permute.xlu0 %896 }
 0xacc   :  { %v915_v29 = vsel %vm174_vm2, %v1618_v44, %v893_v60  ;;  %vm918_vm15 = vcmask 785408   ;;  %s1426_s17 = smov [#allocation2]  }
 0xacd   :  { %v1076_v24 = vshll.u32 %v1075_v20, 16  ;;  %v1061_v28 = vshll.u32 %v1060_v23, 16  ;;  %s1089_s2 = sshll.u32 %s1426_s17, 4  ;;  %v917_v35 = vsel %vm916_vm14, %v915_v29, %v897_v31  ;;  %s1090_s2 = int_to_ptr.vmem [resolvable:$true] %s1089_s2 }
 0xace   :  { %s1394_s20 = scalar_lea.vmem %s1090_s2, 64  ;;  %p1399_p6 = scmp.lt.s32.totalorder %s1090_s2, %s1090_s2 }
 0xacf   :  { %v905_v4 = vpop.permute.xlu1 %904  ;;  %p1395_p5 = scmp.ne.s32.totalorder %s1090_s2, %s1394_s20  ;;  %p1400_p7 = scmp.lt.s32.totalorder %s1394_s20, %s1394_s20 }
 0xad0   :  { %v920_v32 = vsel %vm174_vm2, %v1678_v11, %v905_v4 }
 0xad1   :  { %p1401_p8 = por %p1400_p7, %p1399_p6 }
 0xad3   :  { %v909_v18 = vpop.permute.xlu1 %908  ;;  %p1402_p9 = pnand %p1401_p8, %p1395_p5 }
 0xad4   :  { %v921_v34 = vsel %vm916_vm14, %v920_v32, %v909_v18 }
 0xad7   :  { %v901_v19 = vpop.permute.xlu1 %900 }
 0xad8   :  { %v919_v37 = vsel %vm918_vm15, %v917_v35, %v901_v19 }
 0xb3d   :  { %v1073_v21 = vpop.xlane.xlu1 %1072 }
 0xb3e   :  { %v1074_v25 = vcvt.f32.s32 %v1073_v21 }
 0xb40   :  { %v1077_v26 = vadd.s32 %v1076_v24, %v1074_v25 }
 0xb41   :  { %v1058_v27 = vpop.xlane.xlu1 %1057 }
 0xb42   :  { %1080 = vst.msk [vmem:[%s1760_s8 + $0x8] sm:$0xff] %vm1078_vm13, %v1077_v26  ;;  %v1059_v30 = vcvt.f32.s32 %v1058_v27 }
 0xb44   :  { %v1062_v33 = vadd.s32 %v1061_v28, %v1059_v30 }
 0xb45   :  { %v913_v36 = vpop.permute.xlu1 %912 }
 0xb46   :  { %1079 = vst.msk [vmem:[%s1760_s8] sm:$0xff] %vm1078_vm13, %v1062_v33  ;;  %v922_v44 = vsel %vm918_vm15, %v921_v34, %v913_v36 }
 0xb47   :  { %v925_v38 = vcombine.low %v919_v37, %v922_v44 }
 0xb49   :  { %1130 = vst.sshfl [vmem:[#allocation2] sm:$0x33 pattern:$0x76325410] %v925_v38 }
 0xb4a   :  { %1405 = shalt.err (!%p1402_p9)
}
 0xb4b   :  { %1092 = dma.vmem_to_hbm [thread:$0]  %s1090_s2, 64, %s1761_s9, [#allocation3]  }
 0xb4c   :  { %1414 = dma.done.wait [#allocation3], 64  }
 0xb4d   :  { %1415 = vsyncadd [#allocation3], 4294967232 }
 0xb4e   :  { %1416 = dma.done.wait [#allocation5], 32  }
 0xb4f   :  { %1417 = vsyncadd [#allocation5], 4294967264 }
 0xb50   :  { %1111 = vsyncpa [#allocation3], 1 }
 0xb51   :  { %1112 = vsyncpa [#allocation5], 1 }

</bundles_post_ra>
